<compile_context>
chip_gen: v7x
topology: tpu7x:2x2x1
jax: 0.10.0
libtpu: 0.0.40
codegen_flags: <defaults>
</compile_context>

<pallas_src>
import jax
import jax.numpy as jnp
from jax.experimental import pallas as pl
from jax.experimental.pallas import tpu as pltpu


def encoder_kernel(x_ref, w1_ref, b1_ref, w2_ref, b2_ref, w3_ref, b3_ref,
                   eps_ref, out_ref):
    z_dim = eps_ref.shape[-1]

    x = x_ref[...]

    # fc1 + relu
    h = jnp.dot(x, w1_ref[...], preferred_element_type=jnp.float32) + b1_ref[...]
    h = jnp.maximum(h, 0.0)

    # fc2 + relu
    h = jnp.dot(h, w2_ref[...], preferred_element_type=jnp.float32) + b2_ref[...]
    h = jnp.maximum(h, 0.0)

    # fused heads: one matmul produces [mu | log_var] side by side.
    head = jnp.dot(h, w3_ref[...], preferred_element_type=jnp.float32) + b3_ref[...]
    mu = head[:, :z_dim]
    lv = head[:, z_dim:]

    # reparameterization: z = eps * exp(0.5 * log_var) + mu
    z = eps_ref[...] * jnp.exp(0.5 * lv) + mu

    # single lane-dense output slab: [ z | mu | log_var ]
    out_ref[...] = jnp.concatenate([z, head], axis=-1)


def encoder_forward(x, params, eps, *, block_b=None):
    """Run the full Encoder forward in a single Pallas kernel call."""
    B, x_dim = x.shape
    h_dim = params["w1"].shape[1]
    z_dim = params["w31"].shape[1]

    # Fuse the two head layers (fc31 / fc32) into one weight / bias.
    w3 = jnp.concatenate([params["w31"], params["w32"]], axis=1)   # (h_dim, 2*z)
    b3 = jnp.concatenate([params["b31"], params["b32"]], axis=1)   # (1, 2*z)

    # Batch tiling: large tiles if B grows; for small B it is a single block.
    if block_b is None:
        block_b = min(B, 512)
    assert B % block_b == 0, "demo wrapper assumes B divisible by block_b"
    grid = (B // block_b,)

    resident = lambda shape: pl.BlockSpec(shape, lambda i: (0, 0))   # weights stay put
    batched = lambda shape: pl.BlockSpec(shape, lambda i: (i, 0))    # tile over batch

    in_specs = [
        batched((block_b, x_dim)),       # x
        resident((x_dim, h_dim)),        # w1
        resident((1, h_dim)),            # b1
        resident((h_dim, h_dim)),        # w2
        resident((1, h_dim)),            # b2
        resident((h_dim, 2 * z_dim)),    # w3 = [w31 | w32]
        resident((1, 2 * z_dim)),        # b3 = [b31 | b32]
        batched((block_b, z_dim)),       # eps
    ]
    out_specs = batched((block_b, 3 * z_dim))
    out_shape = jax.ShapeDtypeStruct((B, 3 * z_dim), jnp.float32)

    flops = 2 * B * (x_dim * h_dim + h_dim * h_dim + h_dim * 2 * z_dim)
    bytes_accessed = 4 * (B * x_dim + x_dim * h_dim + h_dim
                          + h_dim * h_dim + h_dim
                          + h_dim * 2 * z_dim + 2 * z_dim
                          + B * z_dim + B * 3 * z_dim)
    cost = pl.CostEstimate(flops=flops,
                           transcendentals=B * z_dim,
                           bytes_accessed=bytes_accessed)

    out = pl.pallas_call(
        encoder_kernel,
        out_shape=out_shape,
        grid=grid,
        in_specs=in_specs,
        out_specs=out_specs,
        compiler_params=pltpu.CompilerParams(
            dimension_semantics=("parallel",)),
        cost_estimate=cost,
    )(x, params["w1"], params["b1"], params["w2"], params["b2"], w3, b3, eps)

    z = out[:, :z_dim]
    mu = out[:, z_dim:2 * z_dim]
    log_var = out[:, 2 * z_dim:]
    return z, mu, log_var


def init_params(key, x_dim, h_dim1, z_dim):
    """Deterministic synthetic parameter init (uniform, like torch Linear default scale)."""
    ks = jax.random.split(key, 8)

    def lin(kw, kb, fan_in, fan_out):
        bound = 1.0 / jnp.sqrt(fan_in)
        w = jax.random.uniform(kw, (fan_in, fan_out), jnp.float32, -bound, bound)
        b = jax.random.uniform(kb, (1, fan_out), jnp.float32, -bound, bound)
        return w, b

    w1, b1 = lin(ks[0], ks[1], x_dim, h_dim1)
    w2, b2 = lin(ks[2], ks[3], h_dim1, h_dim1)
    w31, b31 = lin(ks[4], ks[5], h_dim1, z_dim)
    w32, b32 = lin(ks[6], ks[7], h_dim1, z_dim)
    return dict(w1=w1, b1=b1, w2=w2, b2=b2,
                w31=w31, b31=b31, w32=w32, b32=b32)


def reference_forward(x, params, eps):
    """Pure-JAX reference for correctness checking."""
    h = jnp.maximum(x @ params["w1"] + params["b1"], 0.0)
    h = jnp.maximum(h @ params["w2"] + params["b2"], 0.0)
    mu = h @ params["w31"] + params["b31"]
    lv = h @ params["w32"] + params["b32"]
    z = eps * jnp.exp(0.5 * lv) + mu
    return z, mu, lv


if __name__ == "__main__":
    # Small shapes consistent with the module's forward on flat features.
    B, x_dim, h_dim1, z_dim = 8, 64, 32, 16

    key = jax.random.PRNGKey(0)
    k_params, k_x, k_eps = jax.random.split(key, 3)

    params = init_params(k_params, x_dim, h_dim1, z_dim)
    x = jax.random.normal(k_x, (B, x_dim), jnp.float32)
    # eps for the reparameterization trick (torch.randn_like(std)) — generated
    # deterministically here and passed into the kernel.
    eps = jax.random.normal(k_eps, (B, z_dim), jnp.float32)

    z, mu, log_var = encoder_forward(x, params, eps)
    jax.block_until_ready((z, mu, log_var))

    z_ref, mu_ref, lv_ref = reference_forward(x, params, eps)
    assert jnp.allclose(z, z_ref, atol=1e-5, rtol=1e-5)
    assert jnp.allclose(mu, mu_ref, atol=1e-5, rtol=1e-5)
    assert jnp.allclose(log_var, lv_ref, atol=1e-5, rtol=1e-5)

    print("KERNEL_OK")
</pallas_src>

<mosaic_0001>
module attributes {stable_mosaic.version = 11 : i64} {
  func.func @encoder_kernel(%arg0: i32, %arg1: memref<8x64xf32, #tpu.memory_space<vmem>>, %arg2: memref<64x32xf32, #tpu.memory_space<vmem>>, %arg3: memref<1x32xf32, #tpu.memory_space<vmem>>, %arg4: memref<32x32xf32, #tpu.memory_space<vmem>>, %arg5: memref<1x32xf32, #tpu.memory_space<vmem>>, %arg6: memref<32x32xf32, #tpu.memory_space<vmem>>, %arg7: memref<1x32xf32, #tpu.memory_space<vmem>>, %arg8: memref<8x16xf32, #tpu.memory_space<vmem>>, %arg9: memref<8x48xf32, #tpu.memory_space<vmem>>) attributes {dimension_semantics = [#tpu.dimension_semantics<parallel>], iteration_bounds = array<i64: 1>, scalar_prefetch = 0 : i64, scratch_operands = 0 : i64, tpu.core_type = #tpu.core_type<tc>, window_params = [{transform_indices = @transform_0, window_bounds = array<i64: 8, 64>}, {pipeline_mode = #tpu.pipeline_mode<synchronous>, transform_indices = @transform_1, window_bounds = array<i64: 64, 32>}, {pipeline_mode = #tpu.pipeline_mode<synchronous>, transform_indices = @transform_2, window_bounds = array<i64: 1, 32>}, {pipeline_mode = #tpu.pipeline_mode<synchronous>, transform_indices = @transform_3, window_bounds = array<i64: 32, 32>}, {pipeline_mode = #tpu.pipeline_mode<synchronous>, transform_indices = @transform_4, window_bounds = array<i64: 1, 32>}, {pipeline_mode = #tpu.pipeline_mode<synchronous>, transform_indices = @transform_5, window_bounds = array<i64: 32, 32>}, {pipeline_mode = #tpu.pipeline_mode<synchronous>, transform_indices = @transform_6, window_bounds = array<i64: 1, 32>}, {transform_indices = @transform_7, window_bounds = array<i64: 8, 16>}, {transform_indices = @transform_8, window_bounds = array<i64: 8, 48>}]} {
    %c0 = arith.constant 0 : index
    %c0_0 = arith.constant 0 : index
    %0 = vector.load %arg1[%c0, %c0_0] : memref<8x64xf32, #tpu.memory_space<vmem>>, vector<8x64xf32>
    %c0_1 = arith.constant 0 : index
    %c0_2 = arith.constant 0 : index
    %1 = vector.load %arg2[%c0_1, %c0_2] : memref<64x32xf32, #tpu.memory_space<vmem>>, vector<64x32xf32>
    %cst = arith.constant dense<0.000000e+00> : vector<8x32xf32>
    %2 = tpu.matmul %0, %1, %cst {dimension_numbers = #tpu.dot_dimension_numbers<[1], [0], [0], [1], [0, 0, 1, 1], [], []>} : vector<8x64xf32>, vector<64x32xf32>, vector<8x32xf32> -> vector<8x32xf32>
    %c0_3 = arith.constant 0 : index
    %c0_4 = arith.constant 0 : index
    %3 = vector.load %arg3[%c0_3, %c0_4] : memref<1x32xf32, #tpu.memory_space<vmem>>, vector<1x32xf32>
    %4 = vector.broadcast %3 : vector<1x32xf32> to vector<8x32xf32>
    %5 = arith.addf %2, %4 : vector<8x32xf32>
    %cst_5 = arith.constant 0.000000e+00 : f32
    %6 = vector.broadcast %cst_5 : f32 to vector<8x32xf32>
    %7 = arith.maximumf %5, %6 : vector<8x32xf32>
    %c0_6 = arith.constant 0 : index
    %c0_7 = arith.constant 0 : index
    %8 = vector.load %arg4[%c0_6, %c0_7] : memref<32x32xf32, #tpu.memory_space<vmem>>, vector<32x32xf32>
    %cst_8 = arith.constant dense<0.000000e+00> : vector<8x32xf32>
    %9 = tpu.matmul %7, %8, %cst_8 {dimension_numbers = #tpu.dot_dimension_numbers<[1], [0], [0], [1], [0, 0, 1, 1], [], []>} : vector<8x32xf32>, vector<32x32xf32>, vector<8x32xf32> -> vector<8x32xf32>
    %c0_9 = arith.constant 0 : index
    %c0_10 = arith.constant 0 : index
    %10 = vector.load %arg5[%c0_9, %c0_10] : memref<1x32xf32, #tpu.memory_space<vmem>>, vector<1x32xf32>
    %11 = vector.broadcast %10 : vector<1x32xf32> to vector<8x32xf32>
    %12 = arith.addf %9, %11 : vector<8x32xf32>
    %cst_11 = arith.constant 0.000000e+00 : f32
    %13 = vector.broadcast %cst_11 : f32 to vector<8x32xf32>
    %14 = arith.maximumf %12, %13 : vector<8x32xf32>
    %c0_12 = arith.constant 0 : index
    %c0_13 = arith.constant 0 : index
    %15 = vector.load %arg6[%c0_12, %c0_13] : memref<32x32xf32, #tpu.memory_space<vmem>>, vector<32x32xf32>
    %cst_14 = arith.constant dense<0.000000e+00> : vector<8x32xf32>
    %16 = tpu.matmul %14, %15, %cst_14 {dimension_numbers = #tpu.dot_dimension_numbers<[1], [0], [0], [1], [0, 0, 1, 1], [], []>} : vector<8x32xf32>, vector<32x32xf32>, vector<8x32xf32> -> vector<8x32xf32>
    %c0_15 = arith.constant 0 : index
    %c0_16 = arith.constant 0 : index
    %17 = vector.load %arg7[%c0_15, %c0_16] : memref<1x32xf32, #tpu.memory_space<vmem>>, vector<1x32xf32>
    %18 = vector.broadcast %17 : vector<1x32xf32> to vector<8x32xf32>
    %19 = arith.addf %16, %18 : vector<8x32xf32>
    %20 = vector.extract_strided_slice %19 {offsets = [0, 0], sizes = [8, 16], strides = [1, 1]} : vector<8x32xf32> to vector<8x16xf32>
    %21 = vector.extract_strided_slice %19 {offsets = [0, 16], sizes = [8, 16], strides = [1, 1]} : vector<8x32xf32> to vector<8x16xf32>
    %c0_17 = arith.constant 0 : index
    %c0_18 = arith.constant 0 : index
    %22 = vector.load %arg8[%c0_17, %c0_18] : memref<8x16xf32, #tpu.memory_space<vmem>>, vector<8x16xf32>
    %cst_19 = arith.constant 5.000000e-01 : f32
    %23 = vector.broadcast %cst_19 : f32 to vector<8x16xf32>
    %24 = arith.mulf %23, %21 : vector<8x16xf32>
    %25 = math.exp %24 : vector<8x16xf32>
    %26 = arith.mulf %22, %25 : vector<8x16xf32>
    %27 = arith.addf %26, %20 : vector<8x16xf32>
    %28 = tpu.concatenate %27, %19 in 1 : vector<8x16xf32>, vector<8x32xf32> -> vector<8x48xf32>
    %c0_20 = arith.constant 0 : index
    %c0_21 = arith.constant 0 : index
    %29 = vector.load %arg9[%c0_20, %c0_21] : memref<8x48xf32, #tpu.memory_space<vmem>>, vector<8x48xf32>
    tpu.vector_store %arg9[%c0_20, %c0_21], %28 {strides = array<i32>} : memref<8x48xf32, #tpu.memory_space<vmem>>, vector<8x48xf32>,
    return
  }
  func.func @transform_0(%arg0: i32) -> (i32, i32) {
    %c0_i32 = arith.constant 0 : i32
    %c0_i32_0 = arith.constant 0 : i32
    return %arg0, %c0_i32 : i32, i32
  }
  func.func @transform_1(%arg0: i32) -> (i32, i32) {
    %c0_i32 = arith.constant 0 : i32
    %c0_i32_0 = arith.constant 0 : i32
    %c0_i32_1 = arith.constant 0 : i32
    return %c0_i32, %c0_i32_0 : i32, i32
  }
  func.func @transform_2(%arg0: i32) -> (i32, i32) {
    %c0_i32 = arith.constant 0 : i32
    %c0_i32_0 = arith.constant 0 : i32
    %c0_i32_1 = arith.constant 0 : i32
    return %c0_i32, %c0_i32_0 : i32, i32
  }
  func.func @transform_3(%arg0: i32) -> (i32, i32) {
    %c0_i32 = arith.constant 0 : i32
    %c0_i32_0 = arith.constant 0 : i32
    %c0_i32_1 = arith.constant 0 : i32
    return %c0_i32, %c0_i32_0 : i32, i32
  }
  func.func @transform_4(%arg0: i32) -> (i32, i32) {
    %c0_i32 = arith.constant 0 : i32
    %c0_i32_0 = arith.constant 0 : i32
    %c0_i32_1 = arith.constant 0 : i32
    return %c0_i32, %c0_i32_0 : i32, i32
  }
  func.func @transform_5(%arg0: i32) -> (i32, i32) {
    %c0_i32 = arith.constant 0 : i32
    %c0_i32_0 = arith.constant 0 : i32
    %c0_i32_1 = arith.constant 0 : i32
    return %c0_i32, %c0_i32_0 : i32, i32
  }
  func.func @transform_6(%arg0: i32) -> (i32, i32) {
    %c0_i32 = arith.constant 0 : i32
    %c0_i32_0 = arith.constant 0 : i32
    %c0_i32_1 = arith.constant 0 : i32
    return %c0_i32, %c0_i32_0 : i32, i32
  }
  func.func @transform_7(%arg0: i32) -> (i32, i32) {
    %c0_i32 = arith.constant 0 : i32
    %c0_i32_0 = arith.constant 0 : i32
    return %arg0, %c0_i32 : i32, i32
  }
  func.func @transform_8(%arg0: i32) -> (i32, i32) {
    %c0_i32 = arith.constant 0 : i32
    %c0_i32_0 = arith.constant 0 : i32
    return %arg0, %c0_i32 : i32, i32
  }
}

</mosaic_0001>

<bundles_post_ra>
// kernel: tpu_custom_call.1
= control target key start
LH: loop header
LB: loop body
LE: loop exit
PB: predicated region body
PF: predicated region fallthrough
CT: control target
= control target key end

     0   :  { %v445_v3 = vmov 0.0|0.0   ;;  %vm446_vm0 = vmmov 0   ;;  %v447_v6 = vmov 0.0   ;;  %s576_s0 = inlined_call_operand.vmem [shape: f32[8,64], index: 0, kind: input, shape index: {}]   ;;  %s577_s1 = inlined_call_operand.vmem [shape: f32[64,32], index: 1, kind: input, shape index: {}]   ;;  %s578_s2 = inlined_call_operand.vmem [shape: f32[1,32], index: 2, kind: input, shape index: {}]   ;;  %s579_s3 = inlined_call_operand.vmem [shape: f32[32,32], index: 3, kind: input, shape index: {}]   ;;  %s580_s4 = inlined_call_operand.vmem [shape: f32[1,32], index: 4, kind: input, shape index: {}]   ;;  %s581_s5 = inlined_call_operand.vmem [shape: f32[32,32], index: 5, kind: input, shape index: {}]   ;;  %s582_s6 = inlined_call_operand.vmem [shape: f32[1,32], index: 6, kind: input, shape index: {}]   ;;  %s583_s7 = inlined_call_operand.vmem [shape: f32[8,16], index: 7, kind: input, shape index: {}]   ;;  %s584_s8 = inlined_call_operand.hbm [shape: f32[8,48], index: 8, kind: output, shape index: {}]  }
   0x1   :  { %v31_v0 = vld [vmem:[%s577_s1] sm:$0xff]  ;;  %v32_v1 = vld [vmem:[%s577_s1 + $0x8] sm:$0xff]  ;;  %v33_v2 = vld [vmem:[%s577_s1 + $0x10] sm:$0xff]  ;;  %389 = vmatprep.subr.bf16.mxu0 %v445_v3  ;;  %364 = vmatprep.mubr.msk.f32.mxu0 %vm446_vm0, %v447_v6 }
   0x2   :  { %v390_v4 = vpack.c.bf16 %v32_v1, %v31_v0  ;;  %v34_v5 = vld [vmem:[%s577_s1 + $0x18] sm:$0xff]  ;;  %401 = vmatprep.subr.bf16.mxu1 %v445_v3  ;;  %375 = vmatprep.mubr.msk.f32.mxu1 %vm446_vm0, %v447_v6  ;;  %v121_v8 = vld [vmem:[%s579_s3] sm:$0xff]  ;;  %v122_v9 = vld [vmem:[%s579_s3 + $0x8] sm:$0xff] }
   0x3   :  { %v393_v7 = vpack.c.bf16 %v34_v5, %v33_v2  ;;  %v35_v10 = vld [vmem:[%s577_s1 + $0x20] sm:$0xff]  ;;  %v36_v11 = vld [vmem:[%s577_s1 + $0x28] sm:$0xff]  ;;  %v402_v12 = vpack.c.bf16 %v122_v9, %v121_v8 }
   0x4   :  { %391 = vmatpush3.bf16.msra.mxu0 %v390_v4 }
   0x5   :  { %392 = vmatprep.subr.bf16.mxu0 %v445_v3 }
   0x6   :  { %13 = vsyncpa [#allocation3], 0  ;;  %403 = vmatpush3.bf16.msra.mxu1 %v402_v12  ;;  %v396_v13 = vpack.c.bf16 %v36_v11, %v35_v10  ;;  %v37_v14 = vld [vmem:[%s577_s1 + $0x30] sm:$0xff]  ;;  %v38_v15 = vld [vmem:[%s577_s1 + $0x38] sm:$0xff]  ;;  %vm46_vm1 = vcmask 523264   ;;  %vm132_vm2 = vcmask 261120  }
   0x7   :  { %404 = vmatprep.subr.bf16.mxu1 %v445_v3  ;;  %v399_v16 = vpack.c.bf16 %v38_v15, %v37_v14  ;;  %v30_v17 = vld [vmem:[%s576_s0] sm:$0xff]  ;;  %v123_v18 = vld [vmem:[%s579_s3 + $0x10] sm:$0xff]  ;;  %v124_v19 = vld [vmem:[%s579_s3 + $0x18] sm:$0xff]  ;;  %s450_s21 = smov [#allocation2]   ;;  %vm305_vm3 = vcmask 130048   ;;  %vm307_vm4 = vcmask 392192  }
   0x8   :  { %394 = vmatpush3.bf16.msra.mxu0 %v393_v7  ;;  %v405_v20 = vpack.c.bf16 %v124_v19, %v123_v18  ;;  %v323_v21 = vld [vmem:[%s578_s2] ss:$0 sm:$0xff]  ;;  %v208_v23 = vld [vmem:[%s581_s5 + $0x8] sm:$0xff]  ;;  %v209_v29 = vld [vmem:[%s581_s5 + $0x10] sm:$0xff]  ;;  %s315_s22 = sshll.u32 %s450_s21, 4  ;;  %s316_s22 = int_to_ptr.vmem [resolvable:$true] %s315_s22 }
   0x9   :  { %395 = vmatprep.subr.bf16.mxu0 %v445_v3  ;;  %v207_v22 = vld [vmem:[%s581_s5] sm:$0xff]  ;;  %v210_v30 = vld [vmem:[%s581_s5 + $0x18] sm:$0xff]  ;;  %s448_s5 = smov 112   ;;  %p426_p1 = scmp.lt.s32.totalorder %s316_s22, %s316_s22 }
   0xa   :  { %406 = vmatpush3.bf16.msra.mxu1 %v405_v20  ;;  %v408_v27 = vpack.c.bf16 %v208_v23, %v207_v22  ;;  %v411_v31 = vpack.c.bf16 %v210_v30, %v209_v29  ;;  %v325_v32 = vld [vmem:[%s580_s4] ss:$0 sm:$0xff]  ;;  %s449_s4 = smov 16  }
   0xb   :  { %407 = vmatprep.subr.bf16.mxu1 %v445_v3  ;;  %v327_v37 = vld [vmem:[%s582_s6] ss:$0 sm:$0xff]  ;;  %s421_s6 = scalar_lea.vmem %s316_s22, 128 }
   0xc   :  { %397 = vmatpush3.bf16.msra.mxu0 %v396_v13  ;;  %v291_v44 = vld [vmem:[%s583_s7] sm:$0xff]  ;;  %p422_p0 = scmp.ne.s32.totalorder %s316_s22, %s421_s6  ;;  %p427_p2 = scmp.lt.s32.totalorder %s421_s6, %s421_s6 }
   0xd   :  { %398 = vmatprep.subr.bf16.mxu0 %v445_v3 }
   0xe   :  { %p428_p3 = por %p427_p2, %p426_p1 }
  0x10   :  { %400 = vmatpush3.bf16.msra.mxu0 %v399_v16  ;;  %p429_p4 = pnand %p428_p3, %p422_p0 }
  0x13   :  { %365 = vmatmul.mubr.msk.f32.vlgmr.msra.gmra.mrb[0].mxu0 %vm46_vm1, %v30_v17 }
  0xe6   :  { %v116_v24 = vpop.f32.mrb[0].mxu0 }
  0xe7   :  { %v117_v25 = vadd.f32 %v323_v21, %v116_v24  ;;  %v366_v26 = vpop.f32.mrb[1].mxu0 }
  0xe9   :  { %v120_v28 = vmax.f32 %v117_v25, 0.0 }
  0xeb   :  { %376 = vmatmul.mubr.msk.f32.vlgmr.msra.gmra.mrb[0].mxu1 %vm132_vm2, %v120_v28 }
  0xec   :  { %409 = vmatpush3.bf16.msra.mxu1 %v408_v27  ;;  %386 = vmatprep.mubr.msk.f32.mxu1 %vm446_vm0, %v447_v6 }
  0xed   :  { %410 = vmatprep.subr.bf16.mxu1 %v445_v3 }
  0xf0   :  { %412 = vmatpush3.bf16.msra.mxu1 %v411_v31 }
 0x1be   :  { %v202_v33 = vpop.f32.mrb[0].mxu1 }
 0x1bf   :  { %v203_v34 = vadd.f32 %v325_v32, %v202_v33  ;;  %v377_v35 = vpop.f32.mrb[1].mxu1 }
 0x1c1   :  { %v206_v36 = vmax.f32 %v203_v34, 0.0 }
 0x1c3   :  { %387 = vmatmul.mubr.msk.f32.vlgmr.msra.gmra.mrb[2].mxu1 %vm132_vm2, %v206_v36 }
 0x296   :  { %v287_v38 = vpop.f32.mrb[2].mxu1 }
 0x297   :  { %v288_v39 = vadd.f32 %v327_v37, %v287_v38  ;;  %v388_v40 = vpop.f32.mrb[3].mxu1 }
 0x299   :  { %v292_v41 = vmul.f32 0.5, %v288_v39 }
 0x29b   :  { %v293_v42 = vmul.f32 1.442695, %v292_v41 }
 0x29d   :  { %419 = vpow2.f32 %v293_v42 }
 0x2a7   :  { %v420_v43 = vpop.eup %419 }
 0x2a8   :  { %296 = vrot.lane.b32.xlu0 %v420_v43, %s448_s5 }
 0x2ac   :  { %302 = vrot.lane.b32.xlu0 %v288_v39, %s449_s4 }
 0x31a   :  { %v297_v45 = vpop.permute.xlu0 %296 }
 0x31b   :  { %v299_v46 = vmul.f32 %v297_v45, %v291_v44 }
 0x31d   :  { %v300_v47 = vadd.f32 %v299_v46, %v288_v39 }
 0x31e   :  { %v303_v48 = vpop.permute.xlu0 %302 }
 0x31f   :  { %v306_v49 = vsel %vm305_vm3, %v300_v47, %v303_v48 }
 0x320   :  { %308 = vst.msk [vmem:[#allocation2] sm:$0xff] %vm307_vm4, %v306_v49 }
 0x321   :  { %432 = shalt.err (!%p429_p4)
}
 0x322   :  { %s433_s24 = scalar_lea.hbm %s584_s8, 128 }
 0x323   :  { %p434_p5 = scmp.ne.s32.totalorder %s584_s8, %s433_s24  ;;  %p437_p6 = scmp.lt.u32.totalorder %s433_s24, %s584_s8 }
 0x325   :  { %p439_p7 = pnand %p437_p6, %p434_p5 }
 0x327   :  { %442 = shalt.err (!%p439_p7)
}
 0x328   :  { %318 = dma.vmem_to_hbm [thread:$0]  %s316_s22, 128, %s584_s8, [#allocation3]  }
 0x329   :  { %443 = dma.done.wait [#allocation3], 128  }
 0x32a   :  { %444 = vsyncadd [#allocation3], 4294967168 }
 0x32b   :  { %322 = vsyncpa [#allocation3], 1 }

</bundles_post_ra>
